<compile_context>
chip_gen: v5e
topology: v5e:2x2
jax: 0.10.0
libtpu: 0.0.40
codegen_flags: <defaults>
</compile_context>

<pallas_src>
import jax
import jax.numpy as jnp
from jax.experimental import pallas as pl
from jax.experimental.pallas import tpu as pltpu

EMB = 50                 # embedding_dim == conv in_channels
H = 50                   # conv spatial height
NCH = 40                 # num_actions + num_accepted + 1 (conv spatial width)
KS = (1, 2, 5, 10, 20)   # conv kernel heights
NCONV = len(KS)
NROWS = sum(KS)          # 38 conv-tap rows (conv-major, dk ascending inside each conv)
NROWS_PAD = 40           # pad to a sublane multiple of 8
KMAX = max(KS)           # 20
LANES = H * NCH          # 2000 (lane index = h*NCH + w)
FEAT = NCONV * NCH       # 200 = 5 * num_channels * num_filters
HID = 64


# ----------------------------------------------------------------------------
# pltpu.roll direction probe (resolved once, on the same backend as the kernel).
# ----------------------------------------------------------------------------
def _roll_probe_kernel(x_ref, o_ref):
    o_ref[...] = pltpu.roll(x_ref[...], 1, 1)


_ROLL_IS_JNP = None


def _roll_is_jnp_convention():
    """True iff pltpu.roll(x, s, ax) behaves like jnp.roll(x, s, ax)."""
    global _ROLL_IS_JNP
    if _ROLL_IS_JNP is None:
        x = jnp.arange(8 * 128, dtype=jnp.float32).reshape(8, 128)
        got = pl.pallas_call(
            _roll_probe_kernel,
            out_shape=jax.ShapeDtypeStruct((8, 128), jnp.float32),
            in_specs=[pl.BlockSpec(memory_space=pltpu.MemorySpace.VMEM)],
            out_specs=pl.BlockSpec(memory_space=pltpu.MemorySpace.VMEM),
        )(x)
        _ROLL_IS_JNP = bool(jnp.array_equal(got, jnp.roll(x, 1, axis=1)))
    return _ROLL_IS_JNP


def _shift_down(n):
    """pltpu.roll shift amount that moves lane (i + n) -> lane i (mod LANES)."""
    n %= LANES
    if n == 0:
        return 0
    return (LANES - n) if _roll_is_jnp_convention() else n


# ----------------------------------------------------------------------------
# Kernel: TB batch rows per grid step.
# ----------------------------------------------------------------------------
def critic_kernel(x_ref, wall_ref, cb_ref, hmask_ref, selmask_ref,
                  w0_ref, b0_ref, w1_ref, b1_ref, o_ref):
    # x_ref    (TB, EMB, LANES) bf16 : lane = h*NCH + w
    # wall_ref (NROWS_PAD, EMB) bf16 : conv taps stacked conv-major, dk ascending
    # cb_ref   (NCONV, 1)       f32  : conv biases
    # hmask_ref(NCONV, LANES)   f32  : 1.0 where h < hout(conv), else 0.0
    # selmask  (NCONV, FEAT)    f32  : 1.0 where lane // NCH == conv index
    # w0_ref   (FEAT, HID) bf16 ; b0_ref (1, HID) f32 ; w1_ref (1, HID) f32 ; b1_ref (1,1) f32
    # o_ref    (TB, 1)          f32
    tb = x_ref.shape[0]
    wall = wall_ref[...]
    cb = cb_ref[...]
    hmask = hmask_ref[...]
    selmask = selmask_ref[...]
    tap_shift = [_shift_down(dk * NCH) for dk in range(KMAX)]   # python ints

    feats = []
    for b in range(tb):                                   # static unroll over batch rows
        # all five convs' channel contraction in a single MXU matmul
        p = jnp.dot(wall, x_ref[b], preferred_element_type=jnp.float32)  # (40, LANES)

        # per-conv tap accumulation: tap dk of conv ki lives at lane (h+dk)*NCH + w,
        # so roll that row down by dk*NCH lanes (XLU) and add (VPU).  Fixed shapes,
        # single-row reads only; wrapped-in garbage lanes (h >= hout) are masked below.
        rows = []
        r0 = 0
        for k in KS:
            acc_k = p[r0:r0 + 1, :]
            for dk in range(1, k):
                acc_k = acc_k + pltpu.roll(p[r0 + dk:r0 + dk + 1, :], tap_shift[dk], 1)
            rows.append(acc_k)
            r0 += k
        acc = jnp.concatenate(rows, axis=0)                # (NCONV, LANES)

        # conv bias + ReLU + kill wrapped/invalid-h lanes
        acc = jnp.maximum(acc + cb, 0.0) * hmask

        # full-height MaxPool2d((hout,1)): wrap-around roll/max tree; 2**6 = 64 >= H so
        # every lane ends up holding the per-(conv, w) max.  Direction-agnostic.
        for s in (1, 2, 4, 8, 16, 32):
            acc = jnp.maximum(acc, pltpu.roll(acc, s * NCH, 1))

        # features for this row: value for (conv ki, w) sits at lane ki*NCH + w of row ki
        feats.append(jnp.sum(acc[:, 0:FEAT] * selmask, axis=0, keepdims=True))  # (1, FEAT)

    feat = jnp.concatenate(feats, axis=0).astype(jnp.bfloat16)       # (TB, FEAT)

    # MLP head: one batched Linear(200->64) on the MXU, Linear(64->1) on the VPU.
    h1 = jnp.dot(feat, w0_ref[...], preferred_element_type=jnp.float32)   # (TB, HID)
    h1 = jnp.maximum(h1 + b0_ref[...], 0.0)
    # TODO(synk): nn.Dropout(p=0.5) is stochastic in train mode; treated as identity (eval mode).
    y = jnp.sum(h1 * w1_ref[...], axis=-1, keepdims=True) + b1_ref[...]   # (TB, 1)
    o_ref[...] = y


# ----------------------------------------------------------------------------
# Parameters / wrapper / reference
# ----------------------------------------------------------------------------
def init_params(key, vocab_size=100):
    keys = jax.random.split(key, 16)
    params = {}
    params["embedding"] = jax.random.normal(keys[0], (vocab_size, EMB), jnp.float32) * 0.1
    params["conv_w"] = [
        jax.random.normal(keys[1 + i], (1, EMB, k, 1), jnp.float32) * 0.1
        for i, k in enumerate(KS)
    ]
    params["conv_b"] = [
        jax.random.normal(keys[6 + i], (1,), jnp.float32) * 0.1 for i in range(NCONV)
    ]
    params["w0"] = jax.random.normal(keys[11], (HID, FEAT), jnp.float32) * 0.05
    params["b0"] = jax.random.normal(keys[12], (HID,), jnp.float32) * 0.05
    params["w1"] = jax.random.normal(keys[13], (1, HID), jnp.float32) * 0.05
    params["b1"] = jax.random.normal(keys[14], (1,), jnp.float32) * 0.05
    return params


def critic_forward(tokens, params, tb=8):
    B = tokens.shape[0]
    _roll_is_jnp_convention()        # resolve roll direction before kernel tracing

    # rows per grid step; keep >= 2 grid steps when possible (megacore / pipelining)
    tb = max(1, min(int(tb), B))
    if B > 1 and B // tb < 2:
        tb = max(1, (B + 1) // 2)
    G = pl.cdiv(B, tb)
    B_pad = G * tb

    emb_out = params["embedding"][tokens]                        # (B, 50, 40, EMB)
    # torch `.reshape` equivalent: raw row-major remap to NCHW, flattened over HxW
    x = emb_out.reshape(B, EMB, LANES).astype(jnp.bfloat16)      # (B, EMB, LANES)
    if B_pad > B:
        x = jnp.pad(x, ((0, B_pad - B), (0, 0), (0, 0)))

    # stack conv taps conv-major (dk ascending inside each conv); pad to 40 rows
    rows = []
    for ki, k in enumerate(KS):
        for dk in range(k):
            rows.append(params["conv_w"][ki][0, :, dk, 0])       # (EMB,)
    wall = jnp.stack(rows, axis=0)                               # (NROWS, EMB)
    wall = jnp.pad(wall, ((0, NROWS_PAD - NROWS), (0, 0))).astype(jnp.bfloat16)

    cbias = jnp.concatenate(params["conv_b"]).reshape(NCONV, 1).astype(jnp.float32)

    # static masks (built once on the XLA side, fetched once by the pipeline)
    h_idx = jnp.arange(LANES, dtype=jnp.int32) // NCH
    hout = jnp.asarray([H - k + 1 for k in KS], jnp.int32)
    hmask = (h_idx[None, :] < hout[:, None]).astype(jnp.float32)          # (NCONV, LANES)
    blk_idx = jnp.arange(FEAT, dtype=jnp.int32) // NCH
    selmask = (blk_idx[None, :] ==
               jnp.arange(NCONV, dtype=jnp.int32)[:, None]).astype(jnp.float32)

    w0t = params["w0"].T.astype(jnp.bfloat16)                             # (FEAT, HID)
    b0 = params["b0"].reshape(1, HID).astype(jnp.float32)
    w1 = params["w1"].reshape(1, HID).astype(jnp.float32)
    b1 = params["b1"].reshape(1, 1).astype(jnp.float32)

    # VMEM: 2x double-buffered x block + constants + in-kernel temporaries.
    # Keep headroom for v7x (64 MiB physical); v5e/v6e have 128 MiB.
    x_block_bytes = tb * EMB * LANES * 2
    vmem_limit = int(min(96 * 2**20, max(32 * 2**20, 3 * x_block_bytes + 8 * 2**20)))

    flops = B_pad * 2 * NROWS_PAD * EMB * LANES + B_pad * (2 * FEAT * HID + 2 * HID)
    bytes_accessed = (x.size * 2 + wall.size * 2 + cbias.size * 4 + hmask.size * 4 +
                      selmask.size * 4 + w0t.size * 2 + b0.size * 4 + w1.size * 4 +
                      b1.size * 4 + B_pad * 4)

    out = pl.pallas_call(
        critic_kernel,
        grid=(G,),
        in_specs=[
            pl.BlockSpec((tb, EMB, LANES), lambda g: (g, 0, 0)),          # x (TB rows/step)
            pl.BlockSpec((NROWS_PAD, EMB), lambda g: (0, 0)),             # conv taps
            pl.BlockSpec((NCONV, 1), lambda g: (0, 0)),                   # conv biases
            pl.BlockSpec((NCONV, LANES), lambda g: (0, 0)),               # hmask
            pl.BlockSpec((NCONV, FEAT), lambda g: (0, 0)),                # selmask
            pl.BlockSpec((FEAT, HID), lambda g: (0, 0)),                  # w0^T (bf16)
            pl.BlockSpec((1, HID), lambda g: (0, 0)),                     # b0
            pl.BlockSpec((1, HID), lambda g: (0, 0)),                     # w1
            pl.BlockSpec((1, 1), lambda g: (0, 0)),                       # b1
        ],
        out_specs=pl.BlockSpec((None, tb, 1), lambda g: (g, 0, 0)),
        out_shape=jax.ShapeDtypeStruct((G, tb, 1), jnp.float32),
        compiler_params=pltpu.CompilerParams(
            dimension_semantics=("parallel",),
            vmem_limit_bytes=vmem_limit,
        ),
        cost_estimate=pl.CostEstimate(
            flops=flops, transcendentals=0, bytes_accessed=bytes_accessed),
    )(x, wall, cbias, hmask, selmask, w0t, b0, w1, b1)

    return out.reshape(B_pad)[:B].reshape(B, 1, 1, 1)     # matches torch output shape


def critic_forward_ref(tokens, params):
    """Pure-JAX f32 reference of the PyTorch forward (dropout = identity)."""
    B = tokens.shape[0]
    emb_out = params["embedding"][tokens]
    x = emb_out.reshape(B, EMB, H, NCH)
    pooled = []
    for i, k in enumerate(KS):
        hout = H - k + 1
        out = jnp.zeros((B, hout, NCH), jnp.float32)
        for dk in range(k):
            out = out + jnp.einsum(
                "c,bchw->bhw", params["conv_w"][i][0, :, dk, 0], x[:, :, dk:dk + hout, :]
            )
        out = jnp.maximum(out + params["conv_b"][i][0], 0.0)
        pooled.append(jnp.max(out, axis=1))                  # (B, NCH)
    feat = jnp.concatenate(pooled, axis=1)                   # (B, 200)
    h1 = jnp.maximum(feat @ params["w0"].T + params["b0"], 0.0)
    y = h1 @ params["w1"].T + params["b1"]
    return y.reshape(B, 1, 1, 1)


if __name__ == "__main__":
    key = jax.random.PRNGKey(0)
    pkey, tkey = jax.random.split(key)
    vocab_size = 100
    params = init_params(pkey, vocab_size)

    B = 8
    # token ids whose embedding reshapes to the (B, 50, 50, 40) NCHW conv input
    tokens = jax.random.randint(tkey, (B, H, NCH), 0, vocab_size, dtype=jnp.int32)

    out = critic_forward(tokens, params, tb=4)   # 2 grid steps of 4 rows each
    out = jax.block_until_ready(out)

    ref = critic_forward_ref(tokens, params)
    assert out.shape == (B, 1, 1, 1), out.shape
    # bf16 activations / conv + head weights in the kernel vs f32 reference
    assert jnp.allclose(out, ref, atol=3e-2, rtol=3e-2), (out, ref)
    print("KERNEL_OK")
</pallas_src>

<mosaic_0001>
module attributes {stable_mosaic.version = 11 : i64} {
  func.func @_roll_probe_kernel(%arg0: memref<8x128xf32, #tpu.memory_space<vmem>>, %arg1: memref<8x128xf32, #tpu.memory_space<vmem>>) attributes {dimension_semantics = [], scalar_prefetch = 0 : i64, scratch_operands = 0 : i64, tpu.core_type = #tpu.core_type<tc>} {
    %c0 = arith.constant 0 : index
    %c0_0 = arith.constant 0 : index
    %0 = vector.load %arg0[%c0, %c0_0] : memref<8x128xf32, #tpu.memory_space<vmem>>, vector<8x128xf32>
    %c1_i32 = arith.constant 1 : i32
    %1 = tpu.dynamic_rotate %0 by %c1_i32 dim 1 : vector<8x128xf32>, i32 -> vector<8x128xf32>
    %c0_1 = arith.constant 0 : index
    %c0_2 = arith.constant 0 : index
    %2 = vector.load %arg1[%c0_1, %c0_2] : memref<8x128xf32, #tpu.memory_space<vmem>>, vector<8x128xf32>
    tpu.vector_store %arg1[%c0_1, %c0_2], %1 {strides = array<i32>} : memref<8x128xf32, #tpu.memory_space<vmem>>, vector<8x128xf32>,
    return
  }
}

</mosaic_0001>

<bundles_post_ra>
// kernel: tpu_custom_call.1
= control target key start
LH: loop header
LB: loop body
LE: loop exit
PB: predicated region body
PF: predicated region fallthrough
CT: control target
= control target key end

     0   :  { %6 = vsyncpa [#allocation3], 0  ;;  %s118_s0 = inlined_call_operand.hbm [shape: f32[8,128], index: 0, kind: input, shape index: {}]   ;;  %s119_s1 = inlined_call_operand.hbm [shape: f32[8,128], index: 1, kind: output, shape index: {}]  }
   0x1   :  { %7 = vsyncpa [#allocation4], 0  ;;  %s13_s8 = sshll.u32 %s118_s0, 4  ;;  %s99_s9 = smov [#allocation2]   ;;  %s14_s8 = int_to_ptr.hbm [resolvable:$true] %s13_s8 }
   0x2   :  { %s15_s10 = sshll.u32 %s99_s9, 4  ;;  %s16_s10 = int_to_ptr.vmem [resolvable:$true] %s15_s10 }
   0x3   :  { %18 = dma.hbm_to_vmem [thread:$0]  %s14_s8, 128, %s16_s10, [#allocation3]  }
   0x4   :  { %95 = dma.done.wait [#allocation3], 128  }
   0x5   :  { %96 = vsyncadd [#allocation3], 4294967168  ;;  %v23_v0 = vld [vmem:[#allocation2] sm:$0xff]  ;;  %s100_s11 = smov 1   ;;  %s101_s12 = smov [#allocation5]  }
   0x6   :  { %24 = vrot.lane.b32.xlu0 %v23_v0, %s100_s11  ;;  %s32_s13 = sshll.u32 %s101_s12, 4  ;;  %s34_s16 = sshll.u32 %s119_s1, 4  ;;  %s33_s13 = int_to_ptr.vmem [resolvable:$true] %s32_s13  ;;  %s35_s16 = int_to_ptr.hbm [resolvable:$true] %s34_s16 }
  0x78   :  { %v25_v1 = vpop.permute.xlu0 %24 }
  0x79   :  { %26 = vst [vmem:[#allocation5] sm:$0xff] %v25_v1 }
  0x7a   :  { %37 = dma.vmem_to_hbm [thread:$0]  %s33_s13, 128, %s35_s16, [#allocation4]  }
  0x7b   :  { %97 = dma.done.wait [#allocation4], 128  }
  0x7c   :  { %98 = vsyncadd [#allocation4], 4294967168 }
  0x7d   :  { %42 = vsyncpa [#allocation3], 1 }
  0x7e   :  { %43 = vsyncpa [#allocation4], 1 }

</bundles_post_ra>
